<compile_context>
chip_gen: v7x
topology: tpu7x:2x2x1
jax: 0.10.0
libtpu: 0.0.40
codegen_flags: <defaults>
</compile_context>

<pallas_src>
import math

import jax
import jax.numpy as jnp
import numpy as np
from jax.experimental import pallas as pl
from jax.experimental.pallas import tpu as pltpu

_LANE = 128
_SUB = 8


def _round_up(x, m):
    return ((x + m - 1) // m) * m


def _sublane_multiple(dtype):
    # native sublane tiling: f32 -> 8, bf16 -> 16, int8/bool -> 32
    return _SUB * max(1, 4 // jnp.dtype(dtype).itemsize)


def _truthy(m):
    # masks may arrive as float (threshold at 0.5) or bool (used directly)
    if m.dtype == jnp.bool_:
        return m
    return m > 0.5


def _partials_kernel(logits_ref, prost_ref, needle_ref,
                     bv_ref, xv_ref, v_ref, base_ref, x_ref):
    """Accumulate per-batch partial sums of five elementwise quantities.

    inputs : (B, R, 128) blocks streamed along the inner (reduction) grid axis
    outputs: (B, 8, 128) blocks, resident across the inner axis (one set per
             parallel chunk) — used directly as accumulators.
    """
    k = pl.program_id(1)

    @pl.when(k == 0)
    def _init():
        bv_ref[...] = jnp.zeros_like(bv_ref)
        xv_ref[...] = jnp.zeros_like(xv_ref)
        v_ref[...] = jnp.zeros_like(v_ref)
        base_ref[...] = jnp.zeros_like(base_ref)
        x_ref[...] = jnp.zeros_like(x_ref)

    x = logits_ref[...].astype(jnp.float32)                  # (B, R, 128)
    # Shared BCE-with-logits piece: one exp + one log1p per element (EUP),
    # reused by both loss terms.
    base = jnp.maximum(x, 0.0) + jnp.log1p(jnp.exp(-jnp.abs(x)))
    valid = jnp.logical_and(_truthy(prost_ref[...]),
                            _truthy(needle_ref[...])).astype(jnp.float32)

    b, r, l = x.shape

    def fold(t):
        # (B, R, 128) -> (B, 8, 128): tile-aligned static slices + elementwise
        # vreg adds only (no cross-lane work, no tile-boundary crossing).
        acc = t[:, 0:_SUB, :]
        for i in range(1, r // _SUB):
            acc = acc + t[:, i * _SUB:(i + 1) * _SUB, :]
        return acc

    bv_ref[...] += fold(base * valid)    # sum base*valid   (term0 numerator part)
    xv_ref[...] += fold(x * valid)       # sum x*valid      (term0 label correction)
    v_ref[...] += fold(valid)            # sum valid        (term0 denominator)
    base_ref[...] += fold(base)          # sum base         (term1, target-free part)
    x_ref[...] += fold(x)                # sum x            (term1 soft-target correction)


def multi_term_can_det_loss(cancer_logits, prostate_mask, needle_mask, label,
                            involvement, weights=(1.0, 1.0), *,
                            rows_per_block=None, num_parallel_chunks=2,
                            eps=1e-6):
    """JAX/Pallas equivalent of MultiTermCanDetLoss.forward.

    cancer_logits / prostate_mask / needle_mask : (B, 1, H, W), any float or
        bool dtype (up-cast / thresholded in-register inside the kernel).
    label, involvement : (B,)
    returns scalar float32 loss.
    """
    B, C, H, W = cancer_logits.shape
    assert C == 1
    hw = H * W

    row_align = max(_sublane_multiple(a.dtype)
                    for a in (cancer_logits, prostate_mask, needle_mask))
    rows = -(-hw // _LANE)                       # ceil(hw / 128)
    rows_min = _round_up(max(rows, 1), row_align)

    # rows-per-block: target ~1 MiB of streamed input per grid step.
    in_bytes_per_elem = sum(jnp.dtype(a.dtype).itemsize
                            for a in (cancer_logits, prostate_mask, needle_mask))
    if rows_per_block is None:
        bytes_per_row = B * _LANE * in_bytes_per_elem
        rows_per_block = max((1 << 20) // max(bytes_per_row, 1), row_align)
    R = min(_round_up(rows_per_block, row_align), rows_min)
    rows_pad = _round_up(rows_min, R)
    n_tiles = rows_pad // R

    # Optional two-TensorCore split (v7x megacore); harmless on 1-TC chips.
    if n_tiles >= 2 and num_parallel_chunks > 1:
        n_par = min(int(num_parallel_chunks), n_tiles)
        n_tiles = _round_up(n_tiles, n_par)
        rows_pad = n_tiles * R
        n_inner = n_tiles // n_par
    else:
        n_par, n_inner = 1, n_tiles

    hw_pad = rows_pad * _LANE

    def to_blocks(a):
        a2 = a.reshape(B, hw)
        if hw_pad != hw:
            a2 = jnp.pad(a2, ((0, 0), (0, hw_pad - hw)))   # zeros / False
        return a2.reshape(B, rows_pad, _LANE)

    logits3 = to_blocks(cancer_logits)
    prost3 = to_blocks(prostate_mask)
    needle3 = to_blocks(needle_mask)

    stream_spec = pl.BlockSpec((B, R, _LANE),
                               lambda p, k: (0, p * n_inner + k, 0))
    out_spec = pl.BlockSpec((None, B, _SUB, _LANE), lambda p, k: (p, 0, 0, 0))
    part_shape = jax.ShapeDtypeStruct((n_par, B, _SUB, _LANE), jnp.float32)

    cost = pl.CostEstimate(
        flops=15 * B * hw_pad,
        transcendentals=2 * B * hw_pad,
        bytes_accessed=B * hw_pad * in_bytes_per_elem
                       + 5 * n_par * B * _SUB * _LANE * 4,
    )

    grid_spec = pltpu.PrefetchScalarGridSpec(
        num_scalar_prefetch=0,
        grid=(n_par, n_inner),
        in_specs=[stream_spec, stream_spec, stream_spec],
        out_specs=[out_spec] * 5,
    )

    bv, xv, v, sbase, sx = pl.pallas_call(
        _partials_kernel,
        out_shape=(part_shape,) * 5,
        grid_spec=grid_spec,
        compiler_params=pltpu.CompilerParams(
            dimension_semantics=("parallel", "arbitrary")),
        cost_estimate=cost,
    )(logits3, prost3, needle3)

    # ---- tiny scalar finalize in plain JAX (O(n_par * B * 1024) work) ----
    y = label.reshape(B).astype(jnp.float32)
    inv = involvement.reshape(B).astype(jnp.float32)

    bv_b = jnp.sum(bv, axis=(0, 2, 3))          # (B,)
    xv_b = jnp.sum(xv, axis=(0, 2, 3))          # (B,)
    sx_b = jnp.sum(sx, axis=(0, 2, 3))          # (B,)
    v_tot = jnp.sum(v)
    # zero-padded logits contribute exactly log(2) each to the base sum;
    # valid=0 and x=0 on padding keep the other accumulators clean.
    pad_corr = jnp.float32(B * (hw_pad - hw) * math.log(2.0))
    base_tot = jnp.sum(sbase) - pad_corr

    term0 = (jnp.sum(bv_b) - jnp.sum(y * xv_b)) / (v_tot + eps)
    term1 = (base_tot - jnp.sum(y * inv * sx_b)) / jnp.float32(B * hw)
    w0, w1 = float(weights[0]), float(weights[1])
    return w0 * term0 + w1 * term1


# ----------------------------- reference & test -----------------------------

def _bce_with_logits_ref(x, y):
    return jnp.maximum(x, 0.0) - x * y + jnp.log1p(jnp.exp(-jnp.abs(x)))


def _reference(cancer_logits, prostate_mask, needle_mask, label, involvement,
               weights=(1.0, 1.0), eps=1e-6):
    B, C, H, W = cancer_logits.shape
    x = cancer_logits.reshape(B, H * W).astype(jnp.float32)
    pm = prostate_mask.reshape(B, H * W).astype(jnp.float32)
    nm = needle_mask.reshape(B, H * W).astype(jnp.float32)
    y = label.reshape(B, 1).astype(jnp.float32)
    inv = involvement.reshape(B, 1).astype(jnp.float32)

    valid = jnp.logical_and(pm > 0.5, nm > 0.5).astype(jnp.float32)
    t0 = jnp.sum(_bce_with_logits_ref(x, y) * valid) / (jnp.sum(valid) + eps)
    t1 = jnp.mean(_bce_with_logits_ref(x, y * inv))
    return weights[0] * t0 + weights[1] * t1


def _run_case(key, B, H, W, weights, *, logits_dtype=jnp.float32,
              rows_per_block=None, num_parallel_chunks=2):
    k1, k2, k3, k4, k5 = jax.random.split(key, 5)
    cancer_logits = jax.random.normal(
        k1, (B, 1, H, W), dtype=jnp.float32).astype(logits_dtype)
    prostate_mask = (jax.random.uniform(k2, (B, 1, H, W)) > 0.3).astype(jnp.float32)
    needle_mask = (jax.random.uniform(k3, (B, 1, H, W)) > 0.5).astype(jnp.float32)
    label = (jax.random.uniform(k4, (B,)) > 0.5).astype(jnp.float32)
    involvement = jax.random.uniform(k5, (B,), dtype=jnp.float32)

    loss = multi_term_can_det_loss(cancer_logits, prostate_mask, needle_mask,
                                   label, involvement, weights,
                                   rows_per_block=rows_per_block,
                                   num_parallel_chunks=num_parallel_chunks)
    loss = jax.block_until_ready(loss)
    ref = jax.block_until_ready(
        _reference(cancer_logits, prostate_mask, needle_mask, label,
                   involvement, weights))
    assert np.allclose(np.asarray(loss), np.asarray(ref),
                       rtol=1e-5, atol=1e-5), (float(loss), float(ref))


if __name__ == "__main__":
    key = jax.random.PRNGKey(0)
    ka, kb, kc = jax.random.split(key, 3)

    weights = (1.0, 0.5)   # deterministic loss-term weights (module __init__ arg)

    # Case 1: B=2, 16x16 — single block, exercises the analytic log(2)
    # padding correction (H*W=256 padded to 1024 lanes).
    _run_case(ka, B=2, H=16, W=16, weights=weights)

    # Case 2: B=3, 64x64 with small row-blocks — exercises the 2-D grid
    # (parallel chunks x inner reduction), multi-step accumulation into the
    # resident output blocks, and the init path for each chunk.
    _run_case(kb, B=3, H=64, W=64, weights=weights,
              rows_per_block=8, num_parallel_chunks=2)

    # Case 3: bf16 logits streamed in native dtype (up-cast in-register),
    # non-lane-multiple image, padding correction again.
    _run_case(kc, B=2, H=40, W=24, weights=weights,
              logits_dtype=jnp.bfloat16, rows_per_block=8)

    print("KERNEL_OK")
</pallas_src>

<mosaic_0001>
module attributes {stable_mosaic.version = 11 : i64} {
  func.func @_partials_kernel(%arg0: i32, %arg1: i32, %arg2: memref<2x8x128xf32, #tpu.memory_space<vmem>>, %arg3: memref<2x8x128xf32, #tpu.memory_space<vmem>>, %arg4: memref<2x8x128xf32, #tpu.memory_space<vmem>>, %arg5: memref<1x2x8x128xf32, #tpu.memory_space<vmem>>, %arg6: memref<1x2x8x128xf32, #tpu.memory_space<vmem>>, %arg7: memref<1x2x8x128xf32, #tpu.memory_space<vmem>>, %arg8: memref<1x2x8x128xf32, #tpu.memory_space<vmem>>, %arg9: memref<1x2x8x128xf32, #tpu.memory_space<vmem>>) attributes {dimension_semantics = [#tpu.dimension_semantics<parallel>, #tpu.dimension_semantics<arbitrary>], iteration_bounds = array<i64: 1, 1>, scalar_prefetch = 0 : i64, scratch_operands = 0 : i64, tpu.core_type = #tpu.core_type<tc>, window_params = [{transform_indices = @transform_0, window_bounds = array<i64: 2, 8, 128>}, {transform_indices = @transform_1, window_bounds = array<i64: 2, 8, 128>}, {transform_indices = @transform_2, window_bounds = array<i64: 2, 8, 128>}, {transform_indices = @transform_3, window_bounds = array<i64: 1, 2, 8, 128>}, {transform_indices = @transform_4, window_bounds = array<i64: 1, 2, 8, 128>}, {transform_indices = @transform_5, window_bounds = array<i64: 1, 2, 8, 128>}, {transform_indices = @transform_6, window_bounds = array<i64: 1, 2, 8, 128>}, {transform_indices = @transform_7, window_bounds = array<i64: 1, 2, 8, 128>}]} {
    %c0_i32 = arith.constant 0 : i32
    %0 = arith.cmpi eq, %arg1, %c0_i32 : i32
    %1 = arith.extui %0 : i1 to i32
    %c0_i32_0 = arith.constant 0 : i32
    %2 = arith.cmpi ne, %1, %c0_i32_0 : i32
    scf.if %2 {
      %cst_52 = arith.constant 0.000000e+00 : f32
      %53 = vector.broadcast %cst_52 : f32 to vector<2x8x128xf32>
      %c0_53 = arith.constant 0 : index
      %c0_54 = arith.constant 0 : index
      %c0_55 = arith.constant 0 : index
      %c0_56 = arith.constant 0 : index
      %54 = vector.load %arg5[%c0_53, %c0_54, %c0_55, %c0_56] : memref<1x2x8x128xf32, #tpu.memory_space<vmem>>, vector<1x2x8x128xf32>
      %55 = vector.shape_cast %54 : vector<1x2x8x128xf32> to vector<2x8x128xf32>
      %56 = vector.shape_cast %53 : vector<2x8x128xf32> to vector<1x2x8x128xf32>
      tpu.vector_store %arg5[%c0_53, %c0_54, %c0_55, %c0_56], %56 {strides = array<i32>} : memref<1x2x8x128xf32, #tpu.memory_space<vmem>>, vector<1x2x8x128xf32>,
      %cst_57 = arith.constant 0.000000e+00 : f32
      %57 = vector.broadcast %cst_57 : f32 to vector<2x8x128xf32>
      %c0_58 = arith.constant 0 : index
      %c0_59 = arith.constant 0 : index
      %c0_60 = arith.constant 0 : index
      %c0_61 = arith.constant 0 : index
      %58 = vector.load %arg6[%c0_58, %c0_59, %c0_60, %c0_61] : memref<1x2x8x128xf32, #tpu.memory_space<vmem>>, vector<1x2x8x128xf32>
      %59 = vector.shape_cast %58 : vector<1x2x8x128xf32> to vector<2x8x128xf32>
      %60 = vector.shape_cast %57 : vector<2x8x128xf32> to vector<1x2x8x128xf32>
      tpu.vector_store %arg6[%c0_58, %c0_59, %c0_60, %c0_61], %60 {strides = array<i32>} : memref<1x2x8x128xf32, #tpu.memory_space<vmem>>, vector<1x2x8x128xf32>,
      %cst_62 = arith.constant 0.000000e+00 : f32
      %61 = vector.broadcast %cst_62 : f32 to vector<2x8x128xf32>
      %c0_63 = arith.constant 0 : index
      %c0_64 = arith.constant 0 : index
      %c0_65 = arith.constant 0 : index
      %c0_66 = arith.constant 0 : index
      %62 = vector.load %arg7[%c0_63, %c0_64, %c0_65, %c0_66] : memref<1x2x8x128xf32, #tpu.memory_space<vmem>>, vector<1x2x8x128xf32>
      %63 = vector.shape_cast %62 : vector<1x2x8x128xf32> to vector<2x8x128xf32>
      %64 = vector.shape_cast %61 : vector<2x8x128xf32> to vector<1x2x8x128xf32>
      tpu.vector_store %arg7[%c0_63, %c0_64, %c0_65, %c0_66], %64 {strides = array<i32>} : memref<1x2x8x128xf32, #tpu.memory_space<vmem>>, vector<1x2x8x128xf32>,
      %cst_67 = arith.constant 0.000000e+00 : f32
      %65 = vector.broadcast %cst_67 : f32 to vector<2x8x128xf32>
      %c0_68 = arith.constant 0 : index
      %c0_69 = arith.constant 0 : index
      %c0_70 = arith.constant 0 : index
      %c0_71 = arith.constant 0 : index
      %66 = vector.load %arg8[%c0_68, %c0_69, %c0_70, %c0_71] : memref<1x2x8x128xf32, #tpu.memory_space<vmem>>, vector<1x2x8x128xf32>
      %67 = vector.shape_cast %66 : vector<1x2x8x128xf32> to vector<2x8x128xf32>
      %68 = vector.shape_cast %65 : vector<2x8x128xf32> to vector<1x2x8x128xf32>
      tpu.vector_store %arg8[%c0_68, %c0_69, %c0_70, %c0_71], %68 {strides = array<i32>} : memref<1x2x8x128xf32, #tpu.memory_space<vmem>>, vector<1x2x8x128xf32>,
      %cst_72 = arith.constant 0.000000e+00 : f32
      %69 = vector.broadcast %cst_72 : f32 to vector<2x8x128xf32>
      %c0_73 = arith.constant 0 : index
      %c0_74 = arith.constant 0 : index
      %c0_75 = arith.constant 0 : index
      %c0_76 = arith.constant 0 : index
      %70 = vector.load %arg9[%c0_73, %c0_74, %c0_75, %c0_76] : memref<1x2x8x128xf32, #tpu.memory_space<vmem>>, vector<1x2x8x128xf32>
      %71 = vector.shape_cast %70 : vector<1x2x8x128xf32> to vector<2x8x128xf32>
      %72 = vector.shape_cast %69 : vector<2x8x128xf32> to vector<1x2x8x128xf32>
      tpu.vector_store %arg9[%c0_73, %c0_74, %c0_75, %c0_76], %72 {strides = array<i32>} : memref<1x2x8x128xf32, #tpu.memory_space<vmem>>, vector<1x2x8x128xf32>,
    } else {
    }
    %c0 = arith.constant 0 : index
    %c0_1 = arith.constant 0 : index
    %c0_2 = arith.constant 0 : index
    %3 = vector.load %arg2[%c0, %c0_1, %c0_2] : memref<2x8x128xf32, #tpu.memory_space<vmem>>, vector<2x8x128xf32>
    %cst = arith.constant 0.000000e+00 : f32
    %4 = vector.broadcast %cst : f32 to vector<2x8x128xf32>
    %5 = arith.maximumf %3, %4 : vector<2x8x128xf32>
    %6 = math.absf %3 : vector<2x8x128xf32>
    %cst_3 = arith.constant 0.000000e+00 : f32
    %7 = vector.broadcast %cst_3 : f32 to vector<2x8x128xf32>
    %8 = arith.subf %7, %6 : vector<2x8x128xf32>
    %9 = math.exp %8 : vector<2x8x128xf32>
    %10 = math.log1p %9 : vector<2x8x128xf32>
    %11 = arith.addf %5, %10 : vector<2x8x128xf32>
    %c0_4 = arith.constant 0 : index
    %c0_5 = arith.constant 0 : index
    %c0_6 = arith.constant 0 : index
    %12 = vector.load %arg3[%c0_4, %c0_5, %c0_6] : memref<2x8x128xf32, #tpu.memory_space<vmem>>, vector<2x8x128xf32>
    %cst_7 = arith.constant 5.000000e-01 : f32
    %13 = vector.broadcast %cst_7 : f32 to vector<2x8x128xf32>
    %14 = arith.cmpf ogt, %12, %13 : vector<2x8x128xf32>
    %c0_8 = arith.constant 0 : index
    %c0_9 = arith.constant 0 : index
    %c0_10 = arith.constant 0 : index
    %15 = vector.load %arg4[%c0_8, %c0_9, %c0_10] : memref<2x8x128xf32, #tpu.memory_space<vmem>>, vector<2x8x128xf32>
    %cst_11 = arith.constant 5.000000e-01 : f32
    %16 = vector.broadcast %cst_11 : f32 to vector<2x8x128xf32>
    %17 = arith.cmpf ogt, %15, %16 : vector<2x8x128xf32>
    %18 = arith.andi %14, %17 : vector<2x8x128xi1>
    %19 = arith.extui %18 : vector<2x8x128xi1> to vector<2x8x128xi32>
    %20 = arith.sitofp %19 : vector<2x8x128xi32> to vector<2x8x128xf32>
    %c0_12 = arith.constant 0 : index
    %c0_13 = arith.constant 0 : index
    %c0_14 = arith.constant 0 : index
    %c0_15 = arith.constant 0 : index
    %21 = vector.load %arg5[%c0_12, %c0_13, %c0_14, %c0_15] : memref<1x2x8x128xf32, #tpu.memory_space<vmem>>, vector<1x2x8x128xf32>
    %22 = vector.shape_cast %21 : vector<1x2x8x128xf32> to vector<2x8x128xf32>
    %23 = arith.mulf %11, %20 : vector<2x8x128xf32>
    %24 = arith.addf %22, %23 : vector<2x8x128xf32>
    %c0_16 = arith.constant 0 : index
    %c0_17 = arith.constant 0 : index
    %c0_18 = arith.constant 0 : index
    %c0_19 = arith.constant 0 : index
    %25 = vector.load %arg5[%c0_16, %c0_17, %c0_18, %c0_19] : memref<1x2x8x128xf32, #tpu.memory_space<vmem>>, vector<1x2x8x128xf32>
    %26 = vector.shape_cast %25 : vector<1x2x8x128xf32> to vector<2x8x128xf32>
    %27 = vector.shape_cast %24 : vector<2x8x128xf32> to vector<1x2x8x128xf32>
    tpu.vector_store %arg5[%c0_16, %c0_17, %c0_18, %c0_19], %27 {strides = array<i32>} : memref<1x2x8x128xf32, #tpu.memory_space<vmem>>, vector<1x2x8x128xf32>,
    %c0_20 = arith.constant 0 : index
    %c0_21 = arith.constant 0 : index
    %c0_22 = arith.constant 0 : index
    %c0_23 = arith.constant 0 : index
    %28 = vector.load %arg6[%c0_20, %c0_21, %c0_22, %c0_23] : memref<1x2x8x128xf32, #tpu.memory_space<vmem>>, vector<1x2x8x128xf32>
    %29 = vector.shape_cast %28 : vector<1x2x8x128xf32> to vector<2x8x128xf32>
    %30 = arith.mulf %3, %20 : vector<2x8x128xf32>
    %31 = arith.addf %29, %30 : vector<2x8x128xf32>
    %c0_24 = arith.constant 0 : index
    %c0_25 = arith.constant 0 : index
    %c0_26 = arith.constant 0 : index
    %c0_27 = arith.constant 0 : index
    %32 = vector.load %arg6[%c0_24, %c0_25, %c0_26, %c0_27] : memref<1x2x8x128xf32, #tpu.memory_space<vmem>>, vector<1x2x8x128xf32>
    %33 = vector.shape_cast %32 : vector<1x2x8x128xf32> to vector<2x8x128xf32>
    %34 = vector.shape_cast %31 : vector<2x8x128xf32> to vector<1x2x8x128xf32>
    tpu.vector_store %arg6[%c0_24, %c0_25, %c0_26, %c0_27], %34 {strides = array<i32>} : memref<1x2x8x128xf32, #tpu.memory_space<vmem>>, vector<1x2x8x128xf32>,
    %c0_28 = arith.constant 0 : index
    %c0_29 = arith.constant 0 : index
    %c0_30 = arith.constant 0 : index
    %c0_31 = arith.constant 0 : index
    %35 = vector.load %arg7[%c0_28, %c0_29, %c0_30, %c0_31] : memref<1x2x8x128xf32, #tpu.memory_space<vmem>>, vector<1x2x8x128xf32>
    %36 = vector.shape_cast %35 : vector<1x2x8x128xf32> to vector<2x8x128xf32>
    %37 = arith.addf %36, %20 : vector<2x8x128xf32>
    %c0_32 = arith.constant 0 : index
    %c0_33 = arith.constant 0 : index
    %c0_34 = arith.constant 0 : index
    %c0_35 = arith.constant 0 : index
    %38 = vector.load %arg7[%c0_32, %c0_33, %c0_34, %c0_35] : memref<1x2x8x128xf32, #tpu.memory_space<vmem>>, vector<1x2x8x128xf32>
    %39 = vector.shape_cast %38 : vector<1x2x8x128xf32> to vector<2x8x128xf32>
    %40 = vector.shape_cast %37 : vector<2x8x128xf32> to vector<1x2x8x128xf32>
    tpu.vector_store %arg7[%c0_32, %c0_33, %c0_34, %c0_35], %40 {strides = array<i32>} : memref<1x2x8x128xf32, #tpu.memory_space<vmem>>, vector<1x2x8x128xf32>,
    %c0_36 = arith.constant 0 : index
    %c0_37 = arith.constant 0 : index
    %c0_38 = arith.constant 0 : index
    %c0_39 = arith.constant 0 : index
    %41 = vector.load %arg8[%c0_36, %c0_37, %c0_38, %c0_39] : memref<1x2x8x128xf32, #tpu.memory_space<vmem>>, vector<1x2x8x128xf32>
    %42 = vector.shape_cast %41 : vector<1x2x8x128xf32> to vector<2x8x128xf32>
    %43 = arith.addf %42, %11 : vector<2x8x128xf32>
    %c0_40 = arith.constant 0 : index
    %c0_41 = arith.constant 0 : index
    %c0_42 = arith.constant 0 : index
    %c0_43 = arith.constant 0 : index
    %44 = vector.load %arg8[%c0_40, %c0_41, %c0_42, %c0_43] : memref<1x2x8x128xf32, #tpu.memory_space<vmem>>, vector<1x2x8x128xf32>
    %45 = vector.shape_cast %44 : vector<1x2x8x128xf32> to vector<2x8x128xf32>
    %46 = vector.shape_cast %43 : vector<2x8x128xf32> to vector<1x2x8x128xf32>
    tpu.vector_store %arg8[%c0_40, %c0_41, %c0_42, %c0_43], %46 {strides = array<i32>} : memref<1x2x8x128xf32, #tpu.memory_space<vmem>>, vector<1x2x8x128xf32>,
    %c0_44 = arith.constant 0 : index
    %c0_45 = arith.constant 0 : index
    %c0_46 = arith.constant 0 : index
    %c0_47 = arith.constant 0 : index
    %47 = vector.load %arg9[%c0_44, %c0_45, %c0_46, %c0_47] : memref<1x2x8x128xf32, #tpu.memory_space<vmem>>, vector<1x2x8x128xf32>
    %48 = vector.shape_cast %47 : vector<1x2x8x128xf32> to vector<2x8x128xf32>
    %49 = arith.addf %48, %3 : vector<2x8x128xf32>
    %c0_48 = arith.constant 0 : index
    %c0_49 = arith.constant 0 : index
    %c0_50 = arith.constant 0 : index
    %c0_51 = arith.constant 0 : index
    %50 = vector.load %arg9[%c0_48, %c0_49, %c0_50, %c0_51] : memref<1x2x8x128xf32, #tpu.memory_space<vmem>>, vector<1x2x8x128xf32>
    %51 = vector.shape_cast %50 : vector<1x2x8x128xf32> to vector<2x8x128xf32>
    %52 = vector.shape_cast %49 : vector<2x8x128xf32> to vector<1x2x8x128xf32>
    tpu.vector_store %arg9[%c0_48, %c0_49, %c0_50, %c0_51], %52 {strides = array<i32>} : memref<1x2x8x128xf32, #tpu.memory_space<vmem>>, vector<1x2x8x128xf32>,
    return
  }
  func.func @transform_0(%arg0: i32, %arg1: i32) -> (i32, i32, i32) {
    %c1_i32 = arith.constant 1 : i32
    %0 = arith.muli %arg0, %c1_i32 : i32
    %1 = arith.addi %0, %arg1 : i32
    %c0_i32 = arith.constant 0 : i32
    %c0_i32_0 = arith.constant 0 : i32
    %c0_i32_1 = arith.constant 0 : i32
    return %c0_i32, %1, %c0_i32_0 : i32, i32, i32
  }
  func.func @transform_1(%arg0: i32, %arg1: i32) -> (i32, i32, i32) {
    %c1_i32 = arith.constant 1 : i32
    %0 = arith.muli %arg0, %c1_i32 : i32
    %1 = arith.addi %0, %arg1 : i32
    %c0_i32 = arith.constant 0 : i32
    %c0_i32_0 = arith.constant 0 : i32
    %c0_i32_1 = arith.constant 0 : i32
    return %c0_i32, %1, %c0_i32_0 : i32, i32, i32
  }
  func.func @transform_2(%arg0: i32, %arg1: i32) -> (i32, i32, i32) {
    %c1_i32 = arith.constant 1 : i32
    %0 = arith.muli %arg0, %c1_i32 : i32
    %1 = arith.addi %0, %arg1 : i32
    %c0_i32 = arith.constant 0 : i32
    %c0_i32_0 = arith.constant 0 : i32
    %c0_i32_1 = arith.constant 0 : i32
    return %c0_i32, %1, %c0_i32_0 : i32, i32, i32
  }
  func.func @transform_3(%arg0: i32, %arg1: i32) -> (i32, i32, i32, i32) {
    %c0_i32 = arith.constant 0 : i32
    %c0_i32_0 = arith.constant 0 : i32
    %c0_i32_1 = arith.constant 0 : i32
    %c0_i32_2 = arith.constant 0 : i32
    return %arg0, %c0_i32, %c0_i32_0, %c0_i32_1 : i32, i32, i32, i32
  }
  func.func @transform_4(%arg0: i32, %arg1: i32) -> (i32, i32, i32, i32) {
    %c0_i32 = arith.constant 0 : i32
    %c0_i32_0 = arith.constant 0 : i32
    %c0_i32_1 = arith.constant 0 : i32
    %c0_i32_2 = arith.constant 0 : i32
    return %arg0, %c0_i32, %c0_i32_0, %c0_i32_1 : i32, i32, i32, i32
  }
  func.func @transform_5(%arg0: i32, %arg1: i32) -> (i32, i32, i32, i32) {
    %c0_i32 = arith.constant 0 : i32
    %c0_i32_0 = arith.constant 0 : i32
    %c0_i32_1 = arith.constant 0 : i32
    %c0_i32_2 = arith.constant 0 : i32
    return %arg0, %c0_i32, %c0_i32_0, %c0_i32_1 : i32, i32, i32, i32
  }
  func.func @transform_6(%arg0: i32, %arg1: i32) -> (i32, i32, i32, i32) {
    %c0_i32 = arith.constant 0 : i32
    %c0_i32_0 = arith.constant 0 : i32
    %c0_i32_1 = arith.constant 0 : i32
    %c0_i32_2 = arith.constant 0 : i32
    return %arg0, %c0_i32, %c0_i32_0, %c0_i32_1 : i32, i32, i32, i32
  }
  func.func @transform_7(%arg0: i32, %arg1: i32) -> (i32, i32, i32, i32) {
    %c0_i32 = arith.constant 0 : i32
    %c0_i32_0 = arith.constant 0 : i32
    %c0_i32_1 = arith.constant 0 : i32
    %c0_i32_2 = arith.constant 0 : i32
    return %arg0, %c0_i32, %c0_i32_0, %c0_i32_1 : i32, i32, i32, i32
  }
}

</mosaic_0001>

<bundles_post_ra>
// kernel: tpu_custom_call.1
= control target key start
LH: loop header
LB: loop body
LE: loop exit
PB: predicated region body
PF: predicated region fallthrough
CT: control target
= control target key end

     0   :  { %13 = vsyncpa [#allocation3], 0  ;;  %s677_s0 = inlined_call_operand.hbm [shape: f32[2,8,128], index: 0, kind: input, shape index: {}]   ;;  %s678_s1 = inlined_call_operand.hbm [shape: f32[2,8,128], index: 1, kind: input, shape index: {}]   ;;  %s679_s2 = inlined_call_operand.hbm [shape: f32[2,8,128], index: 2, kind: input, shape index: {}]   ;;  %s680_s3 = inlined_call_operand.hbm [shape: f32[1,2,8,128], index: 3, kind: output, shape index: {0}]   ;;  %s681_s4 = inlined_call_operand.hbm [shape: f32[1,2,8,128], index: 4, kind: output, shape index: {1}]   ;;  %s682_s5 = inlined_call_operand.hbm [shape: f32[1,2,8,128], index: 5, kind: output, shape index: {2}]   ;;  %s683_s6 = inlined_call_operand.hbm [shape: f32[1,2,8,128], index: 6, kind: output, shape index: {3}]   ;;  %s684_s7 = inlined_call_operand.hbm [shape: f32[1,2,8,128], index: 7, kind: output, shape index: {4}]  }
   0x1   :  { %14 = vsyncpa [#allocation6], 0 }
   0x2   :  { %15 = vsyncpa [#allocation4], 0 }
   0x3   :  { %16 = vsyncpa [#allocation10], 0 }
   0x4   :  { %17 = vsyncpa [#allocation13], 0  ;;  %s456_s24 = smov [#allocation5]   ;;  %s457_s26 = smov [#allocation2]  }
   0x5   :  { %s41_s25 = sshll.u32 %s456_s24, 4  ;;  %s26_s27 = sshll.u32 %s457_s26, 4  ;;  %s42_s25 = int_to_ptr.vmem [resolvable:$true] %s41_s25  ;;  %s507_s27 = int_to_ptr.vmem [resolvable:$true] %s26_s27 }
   0x6   :  { %s270_s30 = scalar_lea.hbm %s678_s1, 256 }
   0x7   :  { %p271_p0 = scmp.ne.s32.totalorder %s678_s1, %s270_s30  ;;  %p274_p1 = scmp.lt.u32.totalorder %s270_s30, %s678_s1 }
   0x9   :  { %p276_p2 = pnand %p274_p1, %p271_p0 }
   0xb   :  { %279 = shalt.err (!%p276_p2)
}
   0xc   :  { %s280_s12 = scalar_lea.vmem %s42_s25, 256  ;;  %p285_p4 = scmp.lt.s32.totalorder %s42_s25, %s42_s25 }
   0xd   :  { %p281_p3 = scmp.ne.s32.totalorder %s42_s25, %s280_s12  ;;  %p286_p5 = scmp.lt.s32.totalorder %s280_s12, %s280_s12 }
   0xf   :  { %p287_p6 = por %p286_p5, %p285_p4 }
  0x11   :  { %p288_p7 = pnand %p287_p6, %p281_p3 }
  0x13   :  { %291 = shalt.err (!%p288_p7)
}
  0x14   :  { %s458_s13 = smov 128   ;;  %s459_s14 = smov 8  }
  0x15   :  { %47 = dma.hbm_to_vmem [thread:$0]  %s678_s1, 256, %s42_s25, [#allocation6], %s458_s13, %s458_s13, %s459_s14  }
  0x16   :  { %s292_s19 = scalar_lea.hbm %s677_s0, 256 }
  0x17   :  { %p293_p8 = scmp.ne.s32.totalorder %s677_s0, %s292_s19  ;;  %p296_p9 = scmp.lt.u32.totalorder %s292_s19, %s677_s0 }
  0x19   :  { %p298_p10 = pnand %p296_p9, %p293_p8 }
  0x1b   :  { %301 = shalt.err (!%p298_p10)
}
  0x1c   :  { %s302_s24 = scalar_lea.vmem %s507_s27, 256  ;;  %p307_p12 = scmp.lt.s32.totalorder %s507_s27, %s507_s27 }
  0x1d   :  { %p303_p11 = scmp.ne.s32.totalorder %s507_s27, %s302_s24  ;;  %p308_p13 = scmp.lt.s32.totalorder %s302_s24, %s302_s24 }
  0x1f   :  { %p309_p0 = por %p308_p13, %p307_p12 }
  0x21   :  { %p310_p1 = pnand %p309_p0, %p303_p11 }
  0x23   :  { %313 = shalt.err (!%p310_p1)
}
  0x24   :  { %32 = dma.hbm_to_vmem [thread:$0]  %s677_s0, 256, %s507_s27, [#allocation3], %s458_s13, %s458_s13, %s459_s14  }
  0x25   :  { %s460_s26 = smov [#allocation7]   ;;  %s314_s8 = scalar_lea.hbm %s679_s2, 256 }
  0x26   :  { %s56_s28 = sshll.u32 %s460_s26, 4  ;;  %p315_p2 = scmp.ne.s32.totalorder %s679_s2, %s314_s8  ;;  %s57_s28 = int_to_ptr.vmem [resolvable:$true] %s56_s28 }
  0x27   :  { %p318_p3 = scmp.lt.u32.totalorder %s314_s8, %s679_s2 }
  0x29   :  { %p320_p4 = pnand %p318_p3, %p315_p2 }
  0x2b   :  { %323 = shalt.err (!%p320_p4)
}
  0x2c   :  { %s324_s15 = scalar_lea.vmem %s57_s28, 256  ;;  %p329_p6 = scmp.lt.s32.totalorder %s57_s28, %s57_s28 }
  0x2d   :  { %p325_p5 = scmp.ne.s32.totalorder %s57_s28, %s324_s15  ;;  %p330_p7 = scmp.lt.s32.totalorder %s324_s15, %s324_s15 }
  0x2f   :  { %p331_p8 = por %p330_p7, %p329_p6 }
  0x31   :  { %p332_p9 = pnand %p331_p8, %p325_p5 }
  0x33   :  { %335 = shalt.err (!%p332_p9)
}
  0x34   :  { %62 = dma.hbm_to_vmem [thread:$0]  %s679_s2, 256, %s57_s28, [#allocation6], %s458_s13, %s458_s13, %s459_s14  }
  0x35   :  { %446 = dma.done.wait [#allocation3], 256  }
  0x36   :  { %447 = vsyncadd [#allocation3], 4294967040 }
  0x37   :  { %448 = dma.done.wait [#allocation6], 512  }
  0x38   :  { %449 = vsyncadd [#allocation6], 4294966784  ;;  %v559_v0 = vld [vmem:[#allocation2] sm:$0xff]  ;;  %v121_v1 = vld [vmem:[#allocation5] sm:$0xff]  ;;  %v461_v9 = vmov 0.0   ;;  %s462_s2 = smov [#allocation9]  }
  0x39   :  { %v125_v2 = vld [vmem:[#allocation7] sm:$0xff]  ;;  %v93_v3 = vand.u32 2147483647, %v559_v0  ;;  %vm123_vm0 = vcmp.gt.f32.partialorder %v121_v1, 0.5  ;;  %v562_v4 = vld [vmem:[#allocation2 + $0x8] sm:$0xff]  ;;  %v122_v5 = vld [vmem:[#allocation5 + $0x8] sm:$0xff] }
  0x3a   :  { %vm127_vm1 = vcmp.gt.f32.partialorder %v125_v2, 0.5  ;;  %v94_v6 = vand.u32 2147483647, %v562_v4  ;;  %vm124_vm3 = vcmp.gt.f32.partialorder %v122_v5, 0.5  ;;  %v126_v7 = vld [vmem:[#allocation7 + $0x8] sm:$0xff]  ;;  %167 = vst [vmem:[#allocation14] sm:$0xff] %v559_v0 }
  0x3b   :  { %vm129_vm2 = vmand %vm123_vm0, %vm127_vm1  ;;  %v95_v8 = vsub.f32 0.0, %v93_v3  ;;  %vm128_vm4 = vcmp.gt.f32.partialorder %v126_v7, 0.5  ;;  %168 = vst [vmem:[#allocation14 + $0x8] sm:$0xff] %v562_v4  ;;  %s186_s16 = sshll.u32 %s462_s2, 4  ;;  %s463_s17 = smov [#allocation11]   ;;  %s187_s16 = int_to_ptr.vmem [resolvable:$true] %s186_s16 }
  0x3c   :  { %v565_v10 = vsel %vm129_vm2, 1.0, %v461_v9  ;;  %v96_v12 = vsub.f32 0.0, %v94_v6  ;;  %vm130_vm5 = vmand %vm124_vm3, %vm128_vm4  ;;  %s198_s18 = sshll.u32 %s463_s17, 4  ;;  %s336_s19 = scalar_lea.vmem %s187_s16, 256  ;;  %s577_s18 = int_to_ptr.vmem [resolvable:$true] %s198_s18 }
  0x3d   :  { %v145_v11 = vmul.f32 %v565_v10, %v559_v0  ;;  %v97_v13 = vmul.f32 1.442695, %v95_v8  ;;  %v570_v14 = vsel %vm130_vm5, 1.0, %v461_v9  ;;  %155 = vst [vmem:[#allocation11] sm:$0xff] %v565_v10  ;;  %p337_p10 = scmp.ne.s32.totalorder %s187_s16, %s336_s19  ;;  %p341_p11 = scmp.lt.s32.totalorder %s187_s16, %s187_s16 }
  0x3e   :  { %v99_v15 = vmul.f32 1.442695, %v96_v12  ;;  %v146_v16 = vmul.f32 %v570_v14, %v562_v4  ;;  %156 = vst [vmem:[#allocation11 + $0x8] sm:$0xff] %v570_v14  ;;  %p342_p12 = scmp.lt.s32.totalorder %s336_s19, %s336_s19 }
  0x3f   :  { %262 = vpow2.f32 %v97_v13  ;;  %149 = vst [vmem:[#allocation9] sm:$0xff] %v145_v11 }
  0x40   :  { %264 = vpow2.f32 %v99_v15  ;;  %150 = vst [vmem:[#allocation9 + $0x8] sm:$0xff] %v146_v16  ;;  %p343_p13 = por %p342_p12, %p341_p11 }
  0x42   :  { %p344_p0 = pnand %p343_p13, %p337_p10 }
  0x44   :  { %347 = shalt.err (!%p344_p0)
}
  0x45   :  { %s348_s22 = scalar_lea.hbm %s681_s4, 256 }
  0x46   :  { %p349_p1 = scmp.ne.s32.totalorder %s681_s4, %s348_s22  ;;  %p352_p2 = scmp.lt.u32.totalorder %s348_s22, %s681_s4 }
  0x48   :  { %p354_p3 = pnand %p352_p2, %p349_p1 }
  0x4a   :  { %357 = shalt.err (!%p354_p3)
}
  0x4b   :  { %192 = dma.vmem_to_hbm [thread:$0]  %s187_s16, 256, %s681_s4, [#allocation10], %s458_s13, %s458_s13, %s459_s14  }
  0x4c   :  { %s358_s29 = scalar_lea.vmem %s577_s18, 256  ;;  %p363_p5 = scmp.lt.s32.totalorder %s577_s18, %s577_s18 }
  0x4d   :  { %p359_p4 = scmp.ne.s32.totalorder %s577_s18, %s358_s29  ;;  %p364_p6 = scmp.lt.s32.totalorder %s358_s29, %s358_s29 }
  0x4f   :  { %p365_p7 = por %p364_p6, %p363_p5 }
  0x51   :  { %p366_p8 = pnand %p365_p7, %p359_p4 }
  0x53   :  { %369 = shalt.err (!%p366_p8)
}
  0x54   :  { %s370_s9 = scalar_lea.hbm %s682_s5, 256 }
  0x55   :  { %p371_p9 = scmp.ne.s32.totalorder %s682_s5, %s370_s9  ;;  %p374_p10 = scmp.lt.u32.totalorder %s370_s9, %s682_s5 }
  0x57   :  { %p376_p11 = pnand %p374_p10, %p371_p9 }
  0x59   :  { %379 = shalt.err (!%p376_p11)
}
  0x5a   :  { %204 = dma.vmem_to_hbm [thread:$0]  %s577_s18, 256, %s682_s5, [#allocation10], %s458_s13, %s458_s13, %s459_s14   ;;  %v263_v17 = vpop.eup %262  ;;  %v91_v29 = vmax.f32 %v559_v0, 0.0  ;;  %v92_v33 = vmax.f32 %v562_v4, 0.0 }
  0x5b   :  { %v265_v18 = vpop.eup %264  ;;  %v101_v19 = vadd.f32 1.0, %v263_v17  ;;  %v104_v21 = vmul.f32 -0.5, %v263_v17  ;;  %v107_v24 = vand.u32 2147483647, %v263_v17  ;;  %s464_s5 = smov [#allocation12]   ;;  %s465_s2 = smov [#allocation14]  }
  0x5c   :  { %v110_v20 = vadd.f32 1.0, %v265_v18  ;;  %v113_v22 = vmul.f32 -0.5, %v265_v18  ;;  %v116_v26 = vand.u32 2147483647, %v265_v18  ;;  %s210_s27 = sshll.u32 %s464_s5, 4  ;;  %s222_s16 = sshll.u32 %s465_s2, 4  ;;  %s211_s27 = int_to_ptr.vmem [resolvable:$true] %s210_s27  ;;  %s618_s16 = int_to_ptr.vmem [resolvable:$true] %s222_s16 }
  0x5d   :  { %266 = vlog2.f32 %v101_v19  ;;  %v105_v23 = vadd.f32 1.0, %v104_v21  ;;  %vm108_vm6 = vcmp.lt.f32.partialorder %v107_v24, 0.0004427343  ;;  %s466_s17 = smov [#allocation8]   ;;  %s380_s19 = scalar_lea.vmem %s211_s27, 256 }
  0x5e   :  { %268 = vlog2.f32 %v110_v20  ;;  %v114_v25 = vadd.f32 1.0, %v113_v22  ;;  %vm117_vm7 = vcmp.lt.f32.partialorder %v116_v26, 0.0004427343  ;;  %s174_s18 = sshll.u32 %s466_s17, 4  ;;  %p381_p12 = scmp.ne.s32.totalorder %s211_s27, %s380_s19  ;;  %s620_s18 = int_to_ptr.vmem [resolvable:$true] %s174_s18 }
  0x5f   :  { %v106_v27 = vmul.f32 %v263_v17, %v105_v23  ;;  %p385_p13 = scmp.lt.s32.totalorder %s211_s27, %s211_s27  ;;  %p386_p0 = scmp.lt.s32.totalorder %s380_s19, %s380_s19 }
  0x60   :  { %v115_v30 = vmul.f32 %v265_v18, %v114_v25 }
  0x61   :  { %p387_p1 = por %p386_p0, %p385_p13 }
  0x63   :  { %p388_p2 = pnand %p387_p1, %p381_p12 }
  0x67   :  { %v267_v28 = vpop.eup %266 }
  0x68   :  { %v269_v31 = vpop.eup %268  ;;  %v103_v32 = vmul.f32 0.6931472, %v267_v28 }
  0x69   :  { %v112_v34 = vmul.f32 0.6931472, %v269_v31 }
  0x6a   :  { %v109_v35 = vsel %vm108_vm6, %v106_v27, %v103_v32 }
  0x6b   :  { %v119_v36 = vadd.f32 %v109_v35, %v91_v29  ;;  %v118_v37 = vsel %vm117_vm7, %v115_v30, %v112_v34 }
  0x6c   :  { %v120_v38 = vadd.f32 %v118_v37, %v92_v33 }
  0x6d   :  { %v137_v39 = vmul.f32 %v565_v10, %v119_v36  ;;  %161 = vst [vmem:[#allocation12] sm:$0xff] %v119_v36 }
  0x6e   :  { %v138_v40 = vmul.f32 %v570_v14, %v120_v38  ;;  %162 = vst [vmem:[#allocation12 + $0x8] sm:$0xff] %v120_v38 }
  0x6f   :  { %141 = vst [vmem:[#allocation8] sm:$0xff] %v137_v39 }
  0x70   :  { %391 = shalt.err (!%p388_p2)
}
  0x71   :  { %s392_s22 = scalar_lea.hbm %s683_s6, 256 }
  0x72   :  { %p393_p3 = scmp.ne.s32.totalorder %s683_s6, %s392_s22  ;;  %p396_p4 = scmp.lt.u32.totalorder %s392_s22, %s683_s6 }
  0x74   :  { %p398_p5 = pnand %p396_p4, %p393_p3 }
  0x76   :  { %401 = shalt.err (!%p398_p5)
}
  0x77   :  { %216 = dma.vmem_to_hbm [thread:$0]  %s211_s27, 256, %s683_s6, [#allocation13], %s458_s13, %s458_s13, %s459_s14   ;;  %142 = vst [vmem:[#allocation8 + $0x8] sm:$0xff] %v138_v40 }
  0x78   :  { %s402_s29 = scalar_lea.vmem %s618_s16, 256  ;;  %p407_p7 = scmp.lt.s32.totalorder %s618_s16, %s618_s16 }
  0x79   :  { %p403_p6 = scmp.ne.s32.totalorder %s618_s16, %s402_s29  ;;  %p408_p8 = scmp.lt.s32.totalorder %s402_s29, %s402_s29 }
  0x7b   :  { %p409_p9 = por %p408_p8, %p407_p7 }
  0x7d   :  { %p410_p10 = pnand %p409_p9, %p403_p6 }
  0x7f   :  { %413 = shalt.err (!%p410_p10)
}
  0x80   :  { %s414_s9 = scalar_lea.hbm %s684_s7, 256 }
  0x81   :  { %p415_p11 = scmp.ne.s32.totalorder %s684_s7, %s414_s9  ;;  %p418_p12 = scmp.lt.u32.totalorder %s414_s9, %s684_s7 }
  0x83   :  { %p420_p13 = pnand %p418_p12, %p415_p11 }
  0x85   :  { %423 = shalt.err (!%p420_p13)
}
  0x86   :  { %228 = dma.vmem_to_hbm [thread:$0]  %s618_s16, 256, %s684_s7, [#allocation13], %s458_s13, %s458_s13, %s459_s14  }
  0x87   :  { %s424_s0 = scalar_lea.vmem %s620_s18, 256  ;;  %p429_p1 = scmp.lt.s32.totalorder %s620_s18, %s620_s18 }
  0x88   :  { %p425_p0 = scmp.ne.s32.totalorder %s620_s18, %s424_s0  ;;  %p430_p2 = scmp.lt.s32.totalorder %s424_s0, %s424_s0 }
  0x8a   :  { %p431_p3 = por %p430_p2, %p429_p1 }
  0x8c   :  { %p432_p4 = pnand %p431_p3, %p425_p0 }
  0x8e   :  { %435 = shalt.err (!%p432_p4)
}
  0x8f   :  { %s436_s2 = scalar_lea.hbm %s680_s3, 256 }
  0x90   :  { %p437_p5 = scmp.ne.s32.totalorder %s680_s3, %s436_s2  ;;  %p440_p6 = scmp.lt.u32.totalorder %s436_s2, %s680_s3 }
  0x92   :  { %p442_p7 = pnand %p440_p6, %p437_p5 }
  0x94   :  { %445 = shalt.err (!%p442_p7)
}
  0x95   :  { %180 = dma.vmem_to_hbm [thread:$0]  %s620_s18, 256, %s680_s3, [#allocation4], %s458_s13, %s458_s13, %s459_s14  }
  0x96   :  { %450 = dma.done.wait [#allocation4], 256  }
  0x97   :  { %451 = vsyncadd [#allocation4], 4294967040 }
  0x98   :  { %452 = dma.done.wait [#allocation10], 512  }
  0x99   :  { %453 = vsyncadd [#allocation10], 4294966784 }
  0x9a   :  { %454 = dma.done.wait [#allocation13], 512  }
  0x9b   :  { %455 = vsyncadd [#allocation13], 4294966784 }
  0x9c   :  { %244 = vsyncpa [#allocation3], 1 }
  0x9d   :  { %245 = vsyncpa [#allocation6], 1 }
  0x9e   :  { %246 = vsyncpa [#allocation4], 1 }
  0x9f   :  { %247 = vsyncpa [#allocation10], 1 }
  0xa0   :  { %248 = vsyncpa [#allocation13], 1 }

</bundles_post_ra>
